<compile_context>
chip_gen: v5e
topology: v5e:2x2
jax: 0.10.0
libtpu: 0.0.40
codegen_flags: <defaults>
</compile_context>

<pallas_src>
import functools

import jax
import jax.numpy as jnp
from jax.experimental import pallas as pl
from jax.experimental.pallas import tpu as pltpu


def _combined_loss_kernel(logits_ref, labels_ref, out_ref, acc_ref, *,
                          tile_n, tiles_per_core, n_rows, mask_rows):
    core = pl.program_id(0)   # "parallel" axis (sharded across TCs on v7x)
    step = pl.program_id(1)   # "arbitrary" reduction axis (serial per core)

    @pl.when(step == 0)
    def _init():
        acc_ref[...] = jnp.zeros_like(acc_ref)

    x = logits_ref[...].astype(jnp.float32)        # (tile_n, C) f32
    labels = labels_ref[...]                       # (tile_n, 1) int32

    # Per-row NLL without materializing logp:
    #   nll_i = logsumexp(x_i - m_i) - (x[i, y_i] - m_i)
    m = jnp.max(x, axis=1, keepdims=True)
    shifted = x - m
    lse = jnp.log(jnp.sum(jnp.exp(shifted), axis=1, keepdims=True))

    class_ids = jax.lax.broadcasted_iota(jnp.int32, x.shape, 1)
    hit = class_ids == labels                      # (tile_n, C) bool
    picked = jnp.sum(jnp.where(hit, shifted, 0.0), axis=1, keepdims=True)
    nll = lse - picked                             # (tile_n, 1)

    if mask_rows:
        # Rows from partial edge tiles / overflow tiles of the 2-core split are
        # zeroed here; jnp.where does not propagate NaN/garbage from padding.
        flat_tile = core * tiles_per_core + step
        row_ids = flat_tile * tile_n + jax.lax.broadcasted_iota(
            jnp.int32, nll.shape, 0)
        nll = jnp.where(row_ids < n_rows, nll, 0.0)

    acc_ref[...] += jnp.sum(nll, keepdims=True)    # (1, 1) running sum

    @pl.when(step == pl.num_programs(1) - 1)
    def _epilogue():
        # Partial NLL sum for this core, replicated across the 8 sublanes of a
        # (8, 1)-aligned output block (keeps the out BlockSpec layout-legal).
        out_ref[0] = jnp.broadcast_to(acc_ref[...], (8, 1))


def _vmem_capacity_bytes():
    try:
        cap = getattr(pltpu.get_tpu_info(), "vmem_capacity_bytes", None)
        if cap:
            return int(cap)
    except Exception:
        pass
    return 64 * 1024 * 1024   # conservative default (v7x per-TC VMEM)


def _choose_tile_n(n, c, in_itemsize):
    """Pick the row tile so the f32 working set fits a per-generation budget.

    Working set per step ~= 2 * tile_n*C*in_itemsize   (double-buffered input DMA)
                          + 3 * tile_n*C*4             (f32 cast / shifted / exp-select temps)
                          + small (labels, scalars)
    """
    vmem_cap = _vmem_capacity_bytes()
    budget = min(vmem_cap // 2, 48 * 1024 * 1024)
    per_row = c * (2 * in_itemsize + 3 * 4) + 8
    if 8 * per_row > budget:
        # TODO(synk): C-chunked online-logsumexp path for huge class counts.
        raise ValueError(f"class count C={c} too large for a single row tile")
    t = max(8, budget // per_row)
    if t >= n:
        t = n                                  # full-extent block, always legal
    else:
        t = max(8, (t // 8) * 8)               # keep the sublane-multiple constraint
    vmem_limit = int(max(32 * 1024 * 1024,
                         min(vmem_cap * 3 // 4, budget + 16 * 1024 * 1024)))
    return int(t), vmem_limit


def combined_loss(y_pred, y_true, alpha, beta, gamma, *,
                  tile_rows=None, num_cores=2):
    """y_pred: (N, C) float logits (f32 or bf16); y_true: (N,) int labels.

    tile_rows: optional testing hook to force a small row tile (multiple of 8).
    num_cores: width of the "parallel" grid axis (2 uses both TCs on v7x;
               harmless serial loop on v5e/v6e).
    """
    n, c = y_pred.shape
    labels = y_true.astype(jnp.int32).reshape(n, 1)
    in_itemsize = jnp.dtype(y_pred.dtype).itemsize

    tile_n, vmem_limit = _choose_tile_n(n, c, in_itemsize)
    if tile_rows is not None:
        tile_n = min(int(tile_rows), n)

    num_tiles = pl.cdiv(n, tile_n)
    cores = num_cores if num_tiles >= 2 else 1
    tiles_per_core = pl.cdiv(num_tiles, cores)
    mask_rows = (cores * tiles_per_core * tile_n) != n
    last_block = num_tiles - 1
    needs_clamp = (cores * tiles_per_core) != num_tiles

    if needs_clamp:
        def row_block_map(i, j):
            return (jnp.minimum(i * tiles_per_core + j, last_block), 0)
    else:
        def row_block_map(i, j):
            return (i * tiles_per_core + j, 0)

    kernel = functools.partial(
        _combined_loss_kernel,
        tile_n=tile_n, tiles_per_core=tiles_per_core,
        n_rows=n, mask_rows=mask_rows)

    cost = pl.CostEstimate(
        flops=6 * n * c,
        transcendentals=n * c,
        bytes_accessed=n * c * in_itemsize + n * 4 + cores * 8 * 4)

    partials = pl.pallas_call(
        kernel,
        out_shape=jax.ShapeDtypeStruct((cores, 8, 1), jnp.float32),
        grid_spec=pltpu.PrefetchScalarGridSpec(
            num_scalar_prefetch=0,
            grid=(cores, tiles_per_core),
            in_specs=[pl.BlockSpec((tile_n, c), row_block_map),
                      pl.BlockSpec((tile_n, 1), row_block_map)],
            out_specs=pl.BlockSpec((1, 8, 1), lambda i, j: (i, 0, 0)),
            scratch_shapes=[pltpu.VMEM((1, 1), jnp.float32)]),
        compiler_params=pltpu.CompilerParams(
            dimension_semantics=("parallel", "arbitrary"),
            vmem_limit_bytes=vmem_limit),
        cost_estimate=cost,
    )(y_pred, labels)

    # Scalar epilogue in plain JAX (a handful of flops).
    ce = jnp.sum(partials[:, 0, 0]) * (1.0 / float(n))   # mean cross-entropy
    pt = jnp.exp(-ce)
    focal = (1.0 - pt) ** 2 * ce                          # FocalLoss(alpha=1, gamma=2)
    # KLDivLoss(batchmean)(log_softmax, one_hot) == CE, so gamma folds onto CE.
    return (alpha + gamma) * ce + beta * focal


def _reference(y_pred, y_true, alpha, beta, gamma):
    """Pure-JAX reference mirroring the PyTorch module semantics exactly."""
    y_pred = y_pred.astype(jnp.float32)
    logp = jax.nn.log_softmax(y_pred, axis=1)
    n = y_pred.shape[0]
    nll = -logp[jnp.arange(n), y_true]
    ce = jnp.mean(nll)
    pt = jnp.exp(-ce)
    focal = 1.0 * (1.0 - pt) ** 2 * ce
    oh = jax.nn.one_hot(y_true, y_pred.shape[1], dtype=jnp.float32)
    kl_elem = jnp.where(oh > 0, oh * (jnp.log(jnp.where(oh > 0, oh, 1.0)) - logp), 0.0)
    kl = jnp.sum(kl_elem) / n
    return alpha * ce + beta * focal + gamma * kl


if __name__ == "__main__":
    key = jax.random.PRNGKey(0)
    alpha, beta, gamma = 0.5, 0.3, 0.2   # deterministic module weights

    # 1) Small f32 case (single tile, single core group).
    k1, k2, key = jax.random.split(key, 3)
    N, C = 8, 32
    y_pred = jax.random.normal(k1, (N, C), dtype=jnp.float32)
    y_true = jax.random.randint(k2, (N,), 0, C)
    loss = combined_loss(y_pred, y_true, alpha, beta, gamma)
    jax.block_until_ready(loss)
    ref = _reference(y_pred, y_true, alpha, beta, gamma)
    assert jnp.allclose(loss, ref, atol=1e-5, rtol=1e-5), (loss, ref)

    # 2) Multi-tile + 2-core split + partial-tile masking + overflow-tile clamp.
    k1, k2, key = jax.random.split(key, 3)
    N2, C2 = 20, 32
    y_pred2 = jax.random.normal(k1, (N2, C2), dtype=jnp.float32)
    y_true2 = jax.random.randint(k2, (N2,), 0, C2)
    loss2 = combined_loss(y_pred2, y_true2, alpha, beta, gamma,
                          tile_rows=8, num_cores=2)
    jax.block_until_ready(loss2)
    ref2 = _reference(y_pred2, y_true2, alpha, beta, gamma)
    assert jnp.allclose(loss2, ref2, atol=1e-5, rtol=1e-5), (loss2, ref2)

    # 3) bf16 logits path (halved HBM read; kernel still computes in f32).
    k1, k2, key = jax.random.split(key, 3)
    N3, C3 = 16, 128
    y_pred3 = jax.random.normal(k1, (N3, C3), dtype=jnp.float32).astype(jnp.bfloat16)
    y_true3 = jax.random.randint(k2, (N3,), 0, C3)
    loss3 = combined_loss(y_pred3, y_true3, alpha, beta, gamma)
    jax.block_until_ready(loss3)
    ref3 = _reference(y_pred3.astype(jnp.float32), y_true3, alpha, beta, gamma)
    assert jnp.allclose(loss3, ref3, atol=1e-4, rtol=1e-4), (loss3, ref3)

    print("KERNEL_OK")
</pallas_src>

<mosaic_0001>
module attributes {stable_mosaic.version = 11 : i64} {
  func.func @_combined_loss_kernel(%arg0: i32, %arg1: i32, %arg2: memref<8x32xf32, #tpu.memory_space<vmem>>, %arg3: memref<8x1xi32, #tpu.memory_space<vmem>>, %arg4: memref<1x8x1xf32, #tpu.memory_space<vmem>>, %arg5: memref<1x1xf32, #tpu.memory_space<vmem>>) attributes {dimension_semantics = [#tpu.dimension_semantics<parallel>, #tpu.dimension_semantics<arbitrary>], iteration_bounds = array<i64: 1, 1>, scalar_prefetch = 0 : i64, scratch_operands = 1 : i64, tpu.core_type = #tpu.core_type<tc>, window_params = [{transform_indices = @transform_0, window_bounds = array<i64: 8, 32>}, {transform_indices = @transform_1, window_bounds = array<i64: 8, 1>}, {transform_indices = @transform_2, window_bounds = array<i64: 1, 8, 1>}]} {
    %c0_i32 = arith.constant 0 : i32
    %0 = arith.cmpi eq, %arg1, %c0_i32 : i32
    %1 = arith.extui %0 : i1 to i32
    %c0_i32_0 = arith.constant 0 : i32
    %2 = arith.cmpi ne, %1, %c0_i32_0 : i32
    scf.if %2 {
      %cst_14 = arith.constant 0.000000e+00 : f32
      %32 = vector.broadcast %cst_14 : f32 to vector<1x1xf32>
      %c0_15 = arith.constant 0 : index
      %c0_16 = arith.constant 0 : index
      %33 = vector.load %arg5[%c0_15, %c0_16] : memref<1x1xf32, #tpu.memory_space<vmem>>, vector<1x1xf32>
      tpu.vector_store %arg5[%c0_15, %c0_16], %32 {strides = array<i32>} : memref<1x1xf32, #tpu.memory_space<vmem>>, vector<1x1xf32>,
    } else {
    }
    %c0 = arith.constant 0 : index
    %c0_1 = arith.constant 0 : index
    %3 = vector.load %arg2[%c0, %c0_1] : memref<8x32xf32, #tpu.memory_space<vmem>>, vector<8x32xf32>
    %c0_2 = arith.constant 0 : index
    %c0_3 = arith.constant 0 : index
    %4 = vector.load %arg3[%c0_2, %c0_3] : memref<8x1xi32, #tpu.memory_space<vmem>>, vector<8x1xi32>
    %cst = arith.constant dense<0xFF800000> : vector<8xf32>
    %5 = vector.multi_reduction <maximumf>, %3, %cst [1] : vector<8x32xf32> to vector<8xf32>
    %6 = vector.shape_cast %5 : vector<8xf32> to vector<8x1xf32>
    %7 = vector.broadcast %6 : vector<8x1xf32> to vector<8x32xf32>
    %8 = arith.subf %3, %7 : vector<8x32xf32>
    %9 = math.exp %8 : vector<8x32xf32>
    %cst_4 = arith.constant dense<0.000000e+00> : vector<8xf32>
    %10 = vector.multi_reduction <add>, %9, %cst_4 [1] : vector<8x32xf32> to vector<8xf32>
    %11 = vector.shape_cast %10 : vector<8xf32> to vector<8x1xf32>
    %12 = math.log %11 : vector<8x1xf32>
    %13 = tpu.iota {dimensions = array<i32: 1>} : vector<8x32xi32>
    %14 = vector.broadcast %4 : vector<8x1xi32> to vector<8x32xi32>
    %15 = arith.cmpi eq, %13, %14 : vector<8x32xi32>
    %cst_5 = arith.constant 0.000000e+00 : f32
    %16 = vector.broadcast %cst_5 : f32 to vector<8x32xf32>
    %17 = arith.select %15, %8, %16 : vector<8x32xi1>, vector<8x32xf32>
    %cst_6 = arith.constant dense<0.000000e+00> : vector<8xf32>
    %18 = vector.multi_reduction <add>, %17, %cst_6 [1] : vector<8x32xf32> to vector<8xf32>
    %19 = vector.shape_cast %18 : vector<8xf32> to vector<8x1xf32>
    %20 = arith.subf %12, %19 : vector<8x1xf32>
    %c0_7 = arith.constant 0 : index
    %c0_8 = arith.constant 0 : index
    %21 = vector.load %arg5[%c0_7, %c0_8] : memref<1x1xf32, #tpu.memory_space<vmem>>, vector<1x1xf32>
    %22 = vector.shape_cast %20 : vector<8x1xf32> to vector<1x8x1xf32>
    %cst_9 = arith.constant dense<0.000000e+00> : vector<1xf32>
    %23 = vector.multi_reduction <add>, %22, %cst_9 [1, 2] : vector<1x8x1xf32> to vector<1xf32>
    %24 = vector.shape_cast %23 : vector<1xf32> to vector<1x1x1xf32>
    %25 = vector.extract %24[0, 0, 0] : f32 from vector<1x1x1xf32>
    %26 = vector.broadcast %25 : f32 to vector<1x1xf32>
    %27 = arith.addf %21, %26 : vector<1x1xf32>
    %c0_10 = arith.constant 0 : index
    %c0_11 = arith.constant 0 : index
    %28 = vector.load %arg5[%c0_10, %c0_11] : memref<1x1xf32, #tpu.memory_space<vmem>>, vector<1x1xf32>
    tpu.vector_store %arg5[%c0_10, %c0_11], %27 {strides = array<i32>} : memref<1x1xf32, #tpu.memory_space<vmem>>, vector<1x1xf32>,
    %c0_i32_12 = arith.constant 0 : i32
    %29 = arith.cmpi eq, %arg1, %c0_i32_12 : i32
    %30 = arith.extui %29 : i1 to i32
    %c0_i32_13 = arith.constant 0 : i32
    %31 = arith.cmpi ne, %30, %c0_i32_13 : i32
    scf.if %31 {
      %c0_14 = arith.constant 0 : index
      %c0_15 = arith.constant 0 : index
      %32 = vector.load %arg5[%c0_14, %c0_15] : memref<1x1xf32, #tpu.memory_space<vmem>>, vector<1x1xf32>
      %33 = vector.shape_cast %32 : vector<1x1xf32> to vector<1x1xf32>
      %34 = vector.broadcast %33 : vector<1x1xf32> to vector<8x1xf32>
      %c0_16 = arith.constant 0 : index
      %c0_17 = arith.constant 0 : index
      %c0_18 = arith.constant 0 : index
      %35 = vector.load %arg4[%c0_16, %c0_17, %c0_18] : memref<1x8x1xf32, #tpu.memory_space<vmem>>, vector<1x8x1xf32>
      %36 = vector.shape_cast %35 : vector<1x8x1xf32> to vector<8x1xf32>
      %37 = vector.shape_cast %34 : vector<8x1xf32> to vector<1x8x1xf32>
      tpu.vector_store %arg4[%c0_16, %c0_17, %c0_18], %37 {strides = array<i32>} : memref<1x8x1xf32, #tpu.memory_space<vmem>>, vector<1x8x1xf32>,
    } else {
    }
    return
  }
  func.func @transform_0(%arg0: i32, %arg1: i32) -> (i32, i32) {
    %c1_i32 = arith.constant 1 : i32
    %0 = arith.muli %arg0, %c1_i32 : i32
    %1 = arith.addi %0, %arg1 : i32
    %c0_i32 = arith.constant 0 : i32
    %c0_i32_0 = arith.constant 0 : i32
    return %1, %c0_i32 : i32, i32
  }
  func.func @transform_1(%arg0: i32, %arg1: i32) -> (i32, i32) {
    %c1_i32 = arith.constant 1 : i32
    %0 = arith.muli %arg0, %c1_i32 : i32
    %1 = arith.addi %0, %arg1 : i32
    %c0_i32 = arith.constant 0 : i32
    %c0_i32_0 = arith.constant 0 : i32
    return %1, %c0_i32 : i32, i32
  }
  func.func @transform_2(%arg0: i32, %arg1: i32) -> (i32, i32, i32) {
    %c0_i32 = arith.constant 0 : i32
    %c0_i32_0 = arith.constant 0 : i32
    %c0_i32_1 = arith.constant 0 : i32
    return %arg0, %c0_i32, %c0_i32_0 : i32, i32, i32
  }
}

</mosaic_0001>

<bundles_post_ra>
// kernel: tpu_custom_call.1
= control target key start
LH: loop header
LB: loop body
LE: loop exit
PB: predicated region body
PF: predicated region fallthrough
CT: control target
= control target key end

     0   :  { %vm53_vm0 = vcmask 261120   ;;  %v126_v1 = vmov 0   ;;  %v65_v9 = vlaneseq  ;;  %vm77_vm2 = vcmask 7168   ;;  %s157_s0 = inlined_call_operand.vmem [shape: f32[8,32], index: 0, kind: input, shape index: {}]   ;;  %s158_s1 = inlined_call_operand.vmem [shape: s32[8,1], index: 1, kind: input, shape index: {}]   ;;  %s159_s2 = inlined_call_operand.vmem [shape: f32[1,8,1], index: 2, kind: output, shape index: {}]  }
   0x1   :  { %v51_v0 = vld [vmem:[%s157_s0] sm:$0xff]  ;;  %120 = vset.pattern.permute.xlu0 %v126_v1  ;;  %vm49_vm3 = vcmask 0   ;;  %v127_v20 = vmov 0.0  }
   0x2   :  { %v54_v2 = vsel %vm53_vm0, %v51_v0, -inf  ;;  %v52_v3 = vld [vmem:[%s158_s1] sm:$0xff]  ;;  %v66_v10 = vand.u32 127, %v65_v9  ;;  %50 = vst.msk [vmem:[#allocation2] sm:$0x1] %vm49_vm3, %v127_v20 }
   0x3   :  { %55 = vmax.xlane.f32.xlu0 %v54_v2 }
   0x9   :  { %v76_v28 = vld [vmem:[#allocation2] sm:$0x1] }
  0x17   :  { %68 = vperm.xlu0 %120, %v52_v3  }
  0x76   :  { %v56_v4 = vpop.xlane.xlu0 %55 }
  0x77   :  { %v57_v5 = vsub.f32 %v51_v0, %v56_v4 }
  0x79   :  { %v58_v6 = vmul.f32 1.442695, %v57_v5 }
  0x7b   :  { %122 = vpow2.f32 %v58_v6 }
  0x81   :  { %v123_v7 = vpop.eup %122 }
  0x82   :  { %v60_v8 = vsel %vm53_vm0, %v123_v7, 0.0 }
  0x83   :  { %61 = vadd.xlane.f32.xlu1 %v60_v8 }
  0x89   :  { %v69_v11 = vpop.permute.xlu0 %68 }
  0x8a   :  { %vm70_vm1 = vcmp.eq.s32.totalorder %v66_v10, %v69_v11 }
  0x8b   :  { %v71_v12 = vsel %vm70_vm1, %v57_v5, 0.0 }
  0x8c   :  { %v72_v13 = vsel %vm53_vm0, %v71_v12, 0.0 }
  0x8d   :  { %73 = vadd.xlane.f32.xlu1 %v72_v13 }
  0xf6   :  { %v62_v14 = vpop.xlane.xlu1 %61 }
  0xf7   :  { %124 = vlog2.f32 %v62_v14 }
  0xfd   :  { %v125_v15 = vpop.eup %124 }
  0xfe   :  { %v64_v16 = vmul.f32 0.6931472, %v125_v15 }
 0x100   :  { %v74_v17 = vpop.xlane.xlu1 %73 }
 0x101   :  { %v75_v18 = vsub.f32 %v64_v16, %v74_v17 }
 0x103   :  { %v78_v19 = vsel %vm77_vm2, %v75_v18, 0.0 }
 0x104   :  { %79 = vadd.xlane.f32.xlu2 %v78_v19 }
 0x177   :  { %v80_v21 = vpop.xlane.xlu2 %79 }
 0x178   :  { %v81_v22 = vrot.slane %v80_v21, 4 }
 0x17a   :  { %v82_v23 = vadd.f32 %v81_v22, %v80_v21 }
 0x17c   :  { %v83_v24 = vrot.slane %v82_v23, 2 }
 0x17e   :  { %v84_v25 = vadd.f32 %v83_v24, %v82_v23 }
 0x180   :  { %v85_v26 = vrot.slane %v84_v25, 1 }
 0x182   :  { %v86_v27 = vadd.f32 %v85_v26, %v84_v25 }
 0x184   :  { %116 = vpush %v86_v27 }
 0x1b5   :  { %s117_s0 = spop %116 }
 0x1b6   :  { %v88_v29 = vstv %s117_s0 }
 0x1b7   :  { %v89_v30 = vadd.f32 %v88_v29, %v76_v28 }
 0x1b9   :  { %91 = vst.msk [vmem:[#allocation2] sm:$0x1] %vm49_vm3, %v89_v30 }
 0x1c0   :  { %v121_v31 = vld [vmem:[#allocation2] ss:$0 sm:$0xff] }
 0x1c1   :  { %99 = vst.msk [vmem:[%s159_s2] sm:$0xff] %vm77_vm2, %v121_v31 }

</bundles_post_ra>
